<compile_context>
chip_gen: v5e
topology: v5e:2x2
jax: 0.10.0
libtpu: 0.0.40
codegen_flags: <defaults>
</compile_context>

<pallas_src>
import functools

import jax
import jax.numpy as jnp
from jax.experimental import pallas as pl
from jax.experimental.pallas import tpu as pltpu


def _round_up(x, m):
    return (x + m - 1) // m * m


def _cdiv(a, b):
    return (a + b - 1) // b


def _critic_kernel(x_ref,                      # [C, tb]   bf16 (C = S + A)
                   w1_ref, b1_ref,             # [64, C]   bf16, [64, 1]  f32
                   w2_ref, b2_ref,             # [128, 64] bf16, [128, 1] f32
                   w3_ref, b3_ref,             # [64, 128] bf16, [64, 1]  f32
                   w4_ref, b4_ref,             # [32, 64]  bf16, [32, 1]  f32
                   w5_ref, b5_ref,             # [32, 1]   f32,  [1, 1]   f32
                   out_ref):                   # [1, tb]   f32  (lane-dense)
    """Fused 5-layer MLP, feature-major: h = W @ x, batch on lanes."""
    # Layer 1: single K=16 matmul (concat already folded in the wrapper).
    h = jnp.dot(w1_ref[...], x_ref[...],
                preferred_element_type=jnp.float32) + b1_ref[...]
    h = jnp.maximum(h, 0.0)                                    # [64, tb] f32

    def layer(h_f32, w_ref, b_ref):
        hb = h_f32.astype(w_ref.dtype)                         # bf16 into MXU
        acc = jnp.dot(w_ref[...], hb, preferred_element_type=jnp.float32)
        return jnp.maximum(acc + b_ref[...], 0.0)              # f32 epilogue

    h = layer(h, w2_ref, b2_ref)                               # [128, tb]
    h = layer(h, w3_ref, b3_ref)                               # [64, tb]
    h = layer(h, w4_ref, b4_ref)                               # [32, tb]

    # Final layer (out_features = 1): VPU multiply + cross-sublane reduce.
    # Result is already [1, tb] -> lane-dense store, no relayout needed.
    w5 = w5_ref[...]                                           # [32, 1] f32
    v = jnp.sum(h * w5, axis=0, keepdims=True) + b5_ref[...]   # [1, tb]
    out_ref[...] = v.astype(out_ref.dtype)


def prepare_critic_params(params):
    """One-time weight prep (hoist casts out of the per-forward path).

    `params` stores each linear as (W [in, out], b [out]); the kernel wants
    W^T [out, in] in bf16 and biases as [out, 1] f32 columns.
    """
    (w1, b1), (w2, b2), (w3, b3), (w4, b4), (w5, b5) = params

    def wt(w):
        return jnp.asarray(w).T.astype(jnp.bfloat16)           # [out, in]

    def bc(b):
        return jnp.asarray(b).reshape(-1, 1).astype(jnp.float32)

    return (wt(w1), bc(b1),
            wt(w2), bc(b2),
            wt(w3), bc(b3),
            wt(w4), bc(b4),
            jnp.asarray(w5).reshape(-1, 1).astype(jnp.float32),   # [32, 1]
            jnp.asarray(b5).reshape(1, 1).astype(jnp.float32))    # [1, 1]


@functools.partial(jax.jit, static_argnames=("tile_b",))
def critic_forward(state, action, prepped, *, tile_b=4096):
    """Batch-tiled fused Pallas kernel for the critic MLP.  Returns [B, 1]."""
    B = state.shape[0]
    C = state.shape[1] + action.shape[1]

    # Fused concat + cast + transpose -> single [C, B] bf16 input slab.
    x = jnp.concatenate([state, action], axis=1).astype(jnp.bfloat16).T

    # Batch tile lives on the lane axis -> multiple of 128.  Clamp so large
    # batches always see >=2 grid steps (v7x: both TensorCores get work).
    bp0 = _round_up(B, 128)
    tb = int(tile_b)
    tb = min(tb, max(128, _round_up(_cdiv(bp0, 2), 128)))
    tb = max(128, _round_up(tb, 128))
    Bp = _round_up(B, tb)
    if Bp != B:
        x = jnp.pad(x, ((0, 0), (0, Bp - B)))

    grid = (Bp // tb,)

    def batch_map(i):
        return (0, i)

    def const_map(i):
        return (0, 0)

    in_specs = [pl.BlockSpec((C, tb), batch_map)] + [
        pl.BlockSpec(w.shape, const_map) for w in prepped
    ]

    out = pl.pallas_call(
        _critic_kernel,
        out_shape=jax.ShapeDtypeStruct((1, Bp), jnp.float32),
        grid=grid,
        in_specs=in_specs,
        out_specs=pl.BlockSpec((1, tb), batch_map),
        compiler_params=pltpu.CompilerParams(
            dimension_semantics=("parallel",)),
    )(x, *prepped)

    return out[0, :B].reshape(B, 1)


def init_linear_params(key, in_features, out_features):
    """Deterministic init mimicking PyTorch nn.Linear default (U[-1/sqrt(fan_in), +])."""
    kw, kb = jax.random.split(key)
    bound = 1.0 / jnp.sqrt(jnp.float32(in_features))
    # stored as [in_features, out_features] == W^T of the torch layer
    w = jax.random.uniform(kw, (in_features, out_features), jnp.float32, -bound, bound)
    b = jax.random.uniform(kb, (out_features,), jnp.float32, -bound, bound)
    return w, b


def make_critic_params(key, state_dim, action_dim):
    dims = [(state_dim + action_dim, 64), (64, 128), (128, 64), (64, 32), (32, 1)]
    keys = jax.random.split(key, len(dims))
    return [init_linear_params(k, i, o) for k, (i, o) in zip(keys, dims)]


def critic_reference(state, action, params):
    """Pure-JAX reference mirroring the kernel's mixed precision (bf16 matmul, f32 acc)."""
    (w1, b1), (w2, b2), (w3, b3), (w4, b4), (w5, b5) = params
    x = jnp.concatenate([state, action], axis=1).astype(jnp.bfloat16)
    h = jnp.dot(x, w1.astype(jnp.bfloat16),
                preferred_element_type=jnp.float32) + b1.reshape(1, -1)
    h = jnp.maximum(h, 0.0)
    for (w, b) in [(w2, b2), (w3, b3), (w4, b4)]:
        h = jnp.maximum(
            jnp.dot(h.astype(jnp.bfloat16), w.astype(jnp.bfloat16),
                    preferred_element_type=jnp.float32) + b.reshape(1, -1), 0.0)
    return jnp.sum(h * w5.reshape(1, -1), axis=-1, keepdims=True) + b5.reshape(1, -1)


if __name__ == "__main__":
    # Small shapes consistent with the module's forward.
    B, STATE_DIM, ACTION_DIM = 8, 12, 4

    key = jax.random.PRNGKey(0)
    k_state, k_action, k_params = jax.random.split(key, 3)

    state = jax.random.normal(k_state, (B, STATE_DIM), dtype=jnp.float32)
    action = jax.random.normal(k_action, (B, ACTION_DIM), dtype=jnp.float32)
    params = make_critic_params(k_params, STATE_DIM, ACTION_DIM)

    # NOTE: nn.Dropout(0.1) is defined in __init__ but never applied in
    # forward(), so it is intentionally omitted here.
    prepped = prepare_critic_params(params)           # one-time weight prep
    value = critic_forward(state, action, prepped)
    value = jax.block_until_ready(value)

    ref = critic_reference(state, action, params)
    assert value.shape == (B, 1), value.shape
    assert jnp.allclose(value, ref, atol=1e-3, rtol=1e-3), (
        f"max abs err = {jnp.max(jnp.abs(value - ref))}"
    )

    print("KERNEL_OK")
</pallas_src>

<mosaic_0001>
module attributes {stable_mosaic.version = 11 : i64} {
  func.func @_critic_kernel(%arg0: i32, %arg1: memref<16x128xbf16, #tpu.memory_space<vmem>>, %arg2: memref<64x16xbf16, #tpu.memory_space<vmem>>, %arg3: memref<64x1xf32, #tpu.memory_space<vmem>>, %arg4: memref<128x64xbf16, #tpu.memory_space<vmem>>, %arg5: memref<128x1xf32, #tpu.memory_space<vmem>>, %arg6: memref<64x128xbf16, #tpu.memory_space<vmem>>, %arg7: memref<64x1xf32, #tpu.memory_space<vmem>>, %arg8: memref<32x64xbf16, #tpu.memory_space<vmem>>, %arg9: memref<32x1xf32, #tpu.memory_space<vmem>>, %arg10: memref<32x1xf32, #tpu.memory_space<vmem>>, %arg11: memref<1x1xf32, #tpu.memory_space<vmem>>, %arg12: memref<1x128xf32, #tpu.memory_space<vmem>>) attributes {dimension_semantics = [#tpu.dimension_semantics<parallel>], iteration_bounds = array<i64: 1>, scalar_prefetch = 0 : i64, scratch_operands = 0 : i64, tpu.core_type = #tpu.core_type<tc>, window_params = [{transform_indices = @transform_0, window_bounds = array<i64: 16, 128>}, {pipeline_mode = #tpu.pipeline_mode<synchronous>, transform_indices = @transform_1, window_bounds = array<i64: 64, 16>}, {pipeline_mode = #tpu.pipeline_mode<synchronous>, transform_indices = @transform_2, window_bounds = array<i64: 64, 1>}, {pipeline_mode = #tpu.pipeline_mode<synchronous>, transform_indices = @transform_3, window_bounds = array<i64: 128, 64>}, {pipeline_mode = #tpu.pipeline_mode<synchronous>, transform_indices = @transform_4, window_bounds = array<i64: 128, 1>}, {pipeline_mode = #tpu.pipeline_mode<synchronous>, transform_indices = @transform_5, window_bounds = array<i64: 64, 128>}, {pipeline_mode = #tpu.pipeline_mode<synchronous>, transform_indices = @transform_6, window_bounds = array<i64: 64, 1>}, {pipeline_mode = #tpu.pipeline_mode<synchronous>, transform_indices = @transform_7, window_bounds = array<i64: 32, 64>}, {pipeline_mode = #tpu.pipeline_mode<synchronous>, transform_indices = @transform_8, window_bounds = array<i64: 32, 1>}, {pipeline_mode = #tpu.pipeline_mode<synchronous>, transform_indices = @transform_9, window_bounds = array<i64: 32, 1>}, {pipeline_mode = #tpu.pipeline_mode<synchronous>, transform_indices = @transform_10, window_bounds = array<i64: 1, 1>}, {transform_indices = @transform_11, window_bounds = array<i64: 1, 128>}]} {
    %c0 = arith.constant 0 : index
    %c0_0 = arith.constant 0 : index
    %0 = vector.load %arg2[%c0, %c0_0] : memref<64x16xbf16, #tpu.memory_space<vmem>>, vector<64x16xbf16>
    %c0_1 = arith.constant 0 : index
    %c0_2 = arith.constant 0 : index
    %1 = vector.load %arg1[%c0_1, %c0_2] : memref<16x128xbf16, #tpu.memory_space<vmem>>, vector<16x128xbf16>
    %cst = arith.constant dense<0.000000e+00> : vector<64x128xf32>
    %2 = tpu.matmul %0, %1, %cst {dimension_numbers = #tpu.dot_dimension_numbers<[1], [0], [0], [1], [0, 0, 1, 1], [], []>} : vector<64x16xbf16>, vector<16x128xbf16>, vector<64x128xf32> -> vector<64x128xf32>
    %c0_3 = arith.constant 0 : index
    %c0_4 = arith.constant 0 : index
    %3 = vector.load %arg3[%c0_3, %c0_4] : memref<64x1xf32, #tpu.memory_space<vmem>>, vector<64x1xf32>
    %4 = vector.broadcast %3 : vector<64x1xf32> to vector<64x128xf32>
    %5 = arith.addf %2, %4 : vector<64x128xf32>
    %cst_5 = arith.constant 0.000000e+00 : f32
    %6 = vector.broadcast %cst_5 : f32 to vector<64x128xf32>
    %7 = arith.maximumf %5, %6 : vector<64x128xf32>
    %8 = arith.truncf %7 : vector<64x128xf32> to vector<64x128xbf16>
    %c0_6 = arith.constant 0 : index
    %c0_7 = arith.constant 0 : index
    %9 = vector.load %arg4[%c0_6, %c0_7] : memref<128x64xbf16, #tpu.memory_space<vmem>>, vector<128x64xbf16>
    %cst_8 = arith.constant dense<0.000000e+00> : vector<128x128xf32>
    %10 = tpu.matmul %9, %8, %cst_8 {dimension_numbers = #tpu.dot_dimension_numbers<[1], [0], [0], [1], [0, 0, 1, 1], [], []>} : vector<128x64xbf16>, vector<64x128xbf16>, vector<128x128xf32> -> vector<128x128xf32>
    %c0_9 = arith.constant 0 : index
    %c0_10 = arith.constant 0 : index
    %11 = vector.load %arg5[%c0_9, %c0_10] : memref<128x1xf32, #tpu.memory_space<vmem>>, vector<128x1xf32>
    %12 = vector.broadcast %11 : vector<128x1xf32> to vector<128x128xf32>
    %13 = arith.addf %10, %12 : vector<128x128xf32>
    %cst_11 = arith.constant 0.000000e+00 : f32
    %14 = vector.broadcast %cst_11 : f32 to vector<128x128xf32>
    %15 = arith.maximumf %13, %14 : vector<128x128xf32>
    %16 = arith.truncf %15 : vector<128x128xf32> to vector<128x128xbf16>
    %c0_12 = arith.constant 0 : index
    %c0_13 = arith.constant 0 : index
    %17 = vector.load %arg6[%c0_12, %c0_13] : memref<64x128xbf16, #tpu.memory_space<vmem>>, vector<64x128xbf16>
    %cst_14 = arith.constant dense<0.000000e+00> : vector<64x128xf32>
    %18 = tpu.matmul %17, %16, %cst_14 {dimension_numbers = #tpu.dot_dimension_numbers<[1], [0], [0], [1], [0, 0, 1, 1], [], []>} : vector<64x128xbf16>, vector<128x128xbf16>, vector<64x128xf32> -> vector<64x128xf32>
    %c0_15 = arith.constant 0 : index
    %c0_16 = arith.constant 0 : index
    %19 = vector.load %arg7[%c0_15, %c0_16] : memref<64x1xf32, #tpu.memory_space<vmem>>, vector<64x1xf32>
    %20 = vector.broadcast %19 : vector<64x1xf32> to vector<64x128xf32>
    %21 = arith.addf %18, %20 : vector<64x128xf32>
    %cst_17 = arith.constant 0.000000e+00 : f32
    %22 = vector.broadcast %cst_17 : f32 to vector<64x128xf32>
    %23 = arith.maximumf %21, %22 : vector<64x128xf32>
    %24 = arith.truncf %23 : vector<64x128xf32> to vector<64x128xbf16>
    %c0_18 = arith.constant 0 : index
    %c0_19 = arith.constant 0 : index
    %25 = vector.load %arg8[%c0_18, %c0_19] : memref<32x64xbf16, #tpu.memory_space<vmem>>, vector<32x64xbf16>
    %cst_20 = arith.constant dense<0.000000e+00> : vector<32x128xf32>
    %26 = tpu.matmul %25, %24, %cst_20 {dimension_numbers = #tpu.dot_dimension_numbers<[1], [0], [0], [1], [0, 0, 1, 1], [], []>} : vector<32x64xbf16>, vector<64x128xbf16>, vector<32x128xf32> -> vector<32x128xf32>
    %c0_21 = arith.constant 0 : index
    %c0_22 = arith.constant 0 : index
    %27 = vector.load %arg9[%c0_21, %c0_22] : memref<32x1xf32, #tpu.memory_space<vmem>>, vector<32x1xf32>
    %28 = vector.broadcast %27 : vector<32x1xf32> to vector<32x128xf32>
    %29 = arith.addf %26, %28 : vector<32x128xf32>
    %cst_23 = arith.constant 0.000000e+00 : f32
    %30 = vector.broadcast %cst_23 : f32 to vector<32x128xf32>
    %31 = arith.maximumf %29, %30 : vector<32x128xf32>
    %c0_24 = arith.constant 0 : index
    %c0_25 = arith.constant 0 : index
    %32 = vector.load %arg10[%c0_24, %c0_25] : memref<32x1xf32, #tpu.memory_space<vmem>>, vector<32x1xf32>
    %33 = vector.broadcast %32 : vector<32x1xf32> to vector<32x128xf32>
    %34 = arith.mulf %31, %33 : vector<32x128xf32>
    %cst_26 = arith.constant dense<0.000000e+00> : vector<128xf32>
    %35 = vector.multi_reduction <add>, %34, %cst_26 [0] : vector<32x128xf32> to vector<128xf32>
    %36 = vector.shape_cast %35 : vector<128xf32> to vector<1x128xf32>
    %c0_27 = arith.constant 0 : index
    %c0_28 = arith.constant 0 : index
    %37 = vector.load %arg11[%c0_27, %c0_28] : memref<1x1xf32, #tpu.memory_space<vmem>>, vector<1x1xf32>
    %38 = vector.broadcast %37 : vector<1x1xf32> to vector<1x128xf32>
    %39 = arith.addf %36, %38 : vector<1x128xf32>
    %c0_29 = arith.constant 0 : index
    %c0_30 = arith.constant 0 : index
    %40 = vector.load %arg12[%c0_29, %c0_30] : memref<1x128xf32, #tpu.memory_space<vmem>>, vector<1x128xf32>
    tpu.vector_store %arg12[%c0_29, %c0_30], %39 {strides = array<i32>} : memref<1x128xf32, #tpu.memory_space<vmem>>, vector<1x128xf32>,
    return
  }
  func.func @transform_0(%arg0: i32) -> (i32, i32) {
    %c0_i32 = arith.constant 0 : i32
    %c0_i32_0 = arith.constant 0 : i32
    return %c0_i32, %arg0 : i32, i32
  }
  func.func @transform_1(%arg0: i32) -> (i32, i32) {
    %c0_i32 = arith.constant 0 : i32
    %c0_i32_0 = arith.constant 0 : i32
    %c0_i32_1 = arith.constant 0 : i32
    return %c0_i32, %c0_i32_0 : i32, i32
  }
  func.func @transform_2(%arg0: i32) -> (i32, i32) {
    %c0_i32 = arith.constant 0 : i32
    %c0_i32_0 = arith.constant 0 : i32
    %c0_i32_1 = arith.constant 0 : i32
    return %c0_i32, %c0_i32_0 : i32, i32
  }
  func.func @transform_3(%arg0: i32) -> (i32, i32) {
    %c0_i32 = arith.constant 0 : i32
    %c0_i32_0 = arith.constant 0 : i32
    %c0_i32_1 = arith.constant 0 : i32
    return %c0_i32, %c0_i32_0 : i32, i32
  }
  func.func @transform_4(%arg0: i32) -> (i32, i32) {
    %c0_i32 = arith.constant 0 : i32
    %c0_i32_0 = arith.constant 0 : i32
    %c0_i32_1 = arith.constant 0 : i32
    return %c0_i32, %c0_i32_0 : i32, i32
  }
  func.func @transform_5(%arg0: i32) -> (i32, i32) {
    %c0_i32 = arith.constant 0 : i32
    %c0_i32_0 = arith.constant 0 : i32
    %c0_i32_1 = arith.constant 0 : i32
    return %c0_i32, %c0_i32_0 : i32, i32
  }
  func.func @transform_6(%arg0: i32) -> (i32, i32) {
    %c0_i32 = arith.constant 0 : i32
    %c0_i32_0 = arith.constant 0 : i32
    %c0_i32_1 = arith.constant 0 : i32
    return %c0_i32, %c0_i32_0 : i32, i32
  }
  func.func @transform_7(%arg0: i32) -> (i32, i32) {
    %c0_i32 = arith.constant 0 : i32
    %c0_i32_0 = arith.constant 0 : i32
    %c0_i32_1 = arith.constant 0 : i32
    return %c0_i32, %c0_i32_0 : i32, i32
  }
  func.func @transform_8(%arg0: i32) -> (i32, i32) {
    %c0_i32 = arith.constant 0 : i32
    %c0_i32_0 = arith.constant 0 : i32
    %c0_i32_1 = arith.constant 0 : i32
    return %c0_i32, %c0_i32_0 : i32, i32
  }
  func.func @transform_9(%arg0: i32) -> (i32, i32) {
    %c0_i32 = arith.constant 0 : i32
    %c0_i32_0 = arith.constant 0 : i32
    %c0_i32_1 = arith.constant 0 : i32
    return %c0_i32, %c0_i32_0 : i32, i32
  }
  func.func @transform_10(%arg0: i32) -> (i32, i32) {
    %c0_i32 = arith.constant 0 : i32
    %c0_i32_0 = arith.constant 0 : i32
    %c0_i32_1 = arith.constant 0 : i32
    return %c0_i32, %c0_i32_0 : i32, i32
  }
  func.func @transform_11(%arg0: i32) -> (i32, i32) {
    %c0_i32 = arith.constant 0 : i32
    %c0_i32_0 = arith.constant 0 : i32
    return %c0_i32, %arg0 : i32, i32
  }
}

</mosaic_0001>

<bundles_post_ra>
// kernel: critic_forward.1
= control target key start
LH: loop header
LB: loop body
LE: loop exit
PB: predicated region body
PF: predicated region fallthrough
CT: control target
= control target key end

     0   :  { %v784_v0 = vmov 0   ;;  %vm125_vm0 = vcmask 130048   ;;  %vm331_vm1 = vcmask 523264   ;;  %s1042_s2 = inlined_call_operand.vmem [shape: f32[64,1], index: 2, kind: input, shape index: {}]   ;;  %s1043_s0 = inlined_call_operand.vmem [shape: bf16[16,128], index: 0, kind: input, shape index: {}]   ;;  %s1044_s1 = inlined_call_operand.vmem [shape: bf16[64,16], index: 1, kind: input, shape index: {}]   ;;  %s1045_s4 = inlined_call_operand.vmem [shape: f32[128,1], index: 4, kind: input, shape index: {}]   ;;  %s1046_s6 = inlined_call_operand.vmem [shape: f32[64,1], index: 6, kind: input, shape index: {}]   ;;  %s1047_s10 = inlined_call_operand.<no memory space> [shape: f32[1,1], index: 10, kind: input, shape index: {}]   ;;  %s1048_s8 = inlined_call_operand.vmem [shape: f32[32,1], index: 8, kind: input, shape index: {}]   ;;  %s1049_s9 = inlined_call_operand.vmem [shape: f32[32,1], index: 9, kind: input, shape index: {}]   ;;  %s1050_s3 = inlined_call_operand.vmem [shape: bf16[128,64], index: 3, kind: input, shape index: {}]   ;;  %s1051_s5 = inlined_call_operand.vmem [shape: bf16[64,128], index: 5, kind: input, shape index: {}]   ;;  %s1052_s7 = inlined_call_operand.vmem [shape: bf16[32,64], index: 7, kind: input, shape index: {}]   ;;  %s1053_s11 = inlined_call_operand.vmem [shape: f32[1,128], index: 11, kind: output, shape index: {}]  }
   0x1   :  { %783 = vset.pattern.permute.xlu2 %v784_v0  ;;  %782 = vset.pattern.permute.xlu1 %v784_v0  ;;  %v57_v1 = vld [vmem:[%s1042_s2 + $0x30] sm:$0xff]  ;;  %v55_v2 = vld [vmem:[%s1042_s2 + $0x20] sm:$0xff]  ;;  %v56_v6 = vld [vmem:[%s1042_s2 + $0x28] sm:$0xff]  ;;  %v16_v33 = vstv %s1047_s10 }
   0x2   :  { %v53_v3 = vld [vmem:[%s1042_s2 + $0x10] sm:$0xff]  ;;  %781 = vset.pattern.permute.xlu0 %v784_v0  ;;  %81 = vperm.xlu1 %782, %v55_v2   ;;  %v761_v4 = vld [vmem:[%s1043_s0] sm:$0xff]  ;;  %v58_v7 = vld [vmem:[%s1042_s2 + $0x38] sm:$0xff]  ;;  %17 = vst [vmem:[#allocation2] sm:$0x1] %v16_v33 }
   0x3   :  { %91 = vperm.xlu0 %781, %v57_v1   ;;  %71 = vperm.xlu2 %783, %v53_v3   ;;  %v757_v5 = vld [vmem:[%s1044_s1] sm:$0xff]  ;;  %v54_v8 = vld [vmem:[%s1042_s2 + $0x18] sm:$0xff]  ;;  %v52_v9 = vld [vmem:[%s1042_s2 + $0x8] sm:$0xff] }
   0x4   :  { %145 = vmatpush.bf16.msra.mxu0 %v761_v4  ;;  %v209_v10 = vld [vmem:[%s1045_s4 + $0x70] sm:$0xff]  ;;  %v51_v11 = vld [vmem:[%s1042_s2] sm:$0xff]  ;;  %v758_v12 = vld [vmem:[%s1044_s1 + $0x8] sm:$0xff] }
   0x5   :  { %v207_v13 = vld [vmem:[%s1045_s4 + $0x60] sm:$0xff]  ;;  %v208_v14 = vld [vmem:[%s1045_s4 + $0x68] sm:$0xff]  ;;  %v210_v15 = vld [vmem:[%s1045_s4 + $0x78] sm:$0xff] }
   0x6   :  { %v206_v16 = vld [vmem:[%s1045_s4 + $0x58] sm:$0xff]  ;;  %v203_v17 = vld [vmem:[%s1045_s4 + $0x40] sm:$0xff]  ;;  %v205_v18 = vld [vmem:[%s1045_s4 + $0x50] sm:$0xff] }
   0x7   :  { %687 = vmatmul.msk.bf16.vlgmr.msra.gmra.mxu0 %vm125_vm0, %v757_v5  ;;  %v759_v19 = vld [vmem:[%s1044_s1 + $0x10] sm:$0xff]  ;;  %v202_v21 = vld [vmem:[%s1045_s4 + $0x38] sm:$0xff]  ;;  %v204_v22 = vld [vmem:[%s1045_s4 + $0x48] sm:$0xff] }
   0x8   :  { %v201_v20 = vld [vmem:[%s1045_s4 + $0x30] sm:$0xff]  ;;  %v200_v23 = vld [vmem:[%s1045_s4 + $0x28] sm:$0xff]  ;;  %v199_v25 = vld [vmem:[%s1045_s4 + $0x20] sm:$0xff] }
   0x9   :  { %v197_v24 = vld [vmem:[%s1045_s4 + $0x10] sm:$0xff]  ;;  %v760_v26 = vld [vmem:[%s1044_s1 + $0x18] sm:$0xff]  ;;  %v195_v27 = vld [vmem:[%s1045_s4] sm:$0xff] }
   0xa   :  { %86 = vperm.xlu1 %782, %v56_v6   ;;  %v196_v28 = vld [vmem:[%s1045_s4 + $0x8] sm:$0xff]  ;;  %v198_v29 = vld [vmem:[%s1045_s4 + $0x18] sm:$0xff]  ;;  %v441_v31 = vld [vmem:[%s1046_s6 + $0x20] sm:$0xff] }
   0xb   :  { %96 = vperm.xlu0 %781, %v58_v7   ;;  %76 = vperm.xlu2 %783, %v54_v8   ;;  %v444_v30 = vld [vmem:[%s1046_s6 + $0x38] sm:$0xff]  ;;  %v443_v32 = vld [vmem:[%s1046_s6 + $0x30] sm:$0xff]  ;;  %v442_v36 = vld [vmem:[%s1046_s6 + $0x28] sm:$0xff] }
   0xc   :  { %v439_v34 = vld [vmem:[%s1046_s6 + $0x10] sm:$0xff]  ;;  %v440_v35 = vld [vmem:[%s1046_s6 + $0x18] sm:$0xff]  ;;  %v438_v37 = vld [vmem:[%s1046_s6 + $0x8] sm:$0xff] }
   0xd   :  { %v554_v38 = vld [vmem:[%s1048_s8] sm:$0xff]  ;;  %v556_v40 = vld [vmem:[%s1048_s8 + $0x10] sm:$0xff]  ;;  %v557_v41 = vld [vmem:[%s1048_s8 + $0x18] sm:$0xff] }
   0xe   :  { %v437_v39 = vld [vmem:[%s1046_s6] sm:$0xff]  ;;  %v555_v42 = vld [vmem:[%s1048_s8 + $0x8] sm:$0xff]  ;;  %v619_v44 = vld [vmem:[%s1049_s9 + $0x10] sm:$0xff] }
   0xf   :  { %v618_v43 = vld [vmem:[%s1049_s9 + $0x8] sm:$0xff]  ;;  %v617_v45 = vld [vmem:[%s1049_s9] sm:$0xff]  ;;  %v620_v47 = vld [vmem:[%s1049_s9 + $0x18] sm:$0xff] }
  0x10   :  { %v654_v46 = vld [vmem:[#allocation2] sm:$0x1] }
  0x12   :  { %66 = vperm.xlu1 %782, %v52_v9  }
  0x13   :  { %283 = vperm.xlu2 %783, %v209_v10   ;;  %61 = vperm.xlu0 %781, %v51_v11  }
  0x17   :  { %688 = vmatmul.msk.bf16.gmra.mxu0 %vm125_vm0, %v758_v12 }
  0x1a   :  { %273 = vperm.xlu1 %782, %v207_v13  }
  0x1b   :  { %278 = vperm.xlu2 %783, %v208_v14   ;;  %288 = vperm.xlu0 %781, %v210_v15  }
  0x22   :  { %268 = vperm.xlu1 %782, %v206_v16  }
  0x23   :  { %253 = vperm.xlu2 %783, %v203_v17   ;;  %263 = vperm.xlu0 %781, %v205_v18  }
  0x27   :  { %689 = vmatmul.msk.bf16.gmra.mxu0 %vm125_vm0, %v759_v19 }
  0x2a   :  { %243 = vperm.xlu1 %782, %v201_v20   ;;  %v762_v20 = vld [vmem:[%s1050_s3] sm:$0xff] }
  0x2b   :  { %248 = vperm.xlu2 %783, %v202_v21   ;;  %258 = vperm.xlu0 %781, %v204_v22   ;;  %v767_v21 = vld [vmem:[%s1050_s3 + $0x28] sm:$0xff] }
  0x2c   :  { %v763_v22 = vld [vmem:[%s1050_s3 + $0x8] sm:$0xff] }
  0x32   :  { %238 = vperm.xlu1 %782, %v200_v23   ;;  %v768_v23 = vld [vmem:[%s1050_s3 + $0x30] sm:$0xff] }
  0x33   :  { %223 = vperm.xlu2 %783, %v197_v24   ;;  %233 = vperm.xlu0 %781, %v199_v25   ;;  %v764_v24 = vld [vmem:[%s1050_s3 + $0x10] sm:$0xff]  ;;  %v769_v25 = vld [vmem:[%s1050_s3 + $0x38] sm:$0xff] }
  0x37   :  { %690 = vmatmul.msk.bf16.gmra.mxu0 %vm125_vm0, %v760_v26  ;;  %v765_v26 = vld [vmem:[%s1050_s3 + $0x18] sm:$0xff] }
  0x3a   :  { %213 = vperm.xlu1 %782, %v195_v27   ;;  %v766_v27 = vld [vmem:[%s1050_s3 + $0x20] sm:$0xff] }
  0x3b   :  { %218 = vperm.xlu2 %783, %v196_v28   ;;  %228 = vperm.xlu0 %781, %v198_v29  }
  0x42   :  { %482 = vperm.xlu1 %782, %v444_v30  }
  0x43   :  { %467 = vperm.xlu2 %783, %v441_v31   ;;  %477 = vperm.xlu0 %781, %v443_v32  }
  0x4a   :  { %457 = vperm.xlu1 %782, %v439_v34  }
  0x4b   :  { %462 = vperm.xlu2 %783, %v440_v35   ;;  %472 = vperm.xlu0 %781, %v442_v36  }
  0x52   :  { %452 = vperm.xlu1 %782, %v438_v37  }
  0x53   :  { %560 = vperm.xlu2 %783, %v554_v38   ;;  %447 = vperm.xlu0 %781, %v437_v39  }
  0x5a   :  { %570 = vperm.xlu1 %782, %v556_v40  }
  0x5b   :  { %575 = vperm.xlu2 %783, %v557_v41   ;;  %565 = vperm.xlu0 %781, %v555_v42  }
  0x5d   :  { %v72_v57 = vpop.permute.xlu2 %71 }
  0x62   :  { %628 = vperm.xlu1 %782, %v618_v43  }
  0x63   :  { %633 = vperm.xlu2 %783, %v619_v44   ;;  %623 = vperm.xlu0 %781, %v617_v45  }
  0x65   :  { %v77_v3 = vpop.permute.xlu2 %76 }
  0x6a   :  { %657 = vperm.xlu1 %782, %v654_v46  }
  0x6b   :  { %638 = vperm.xlu0 %781, %v620_v47  }
  0x6d   :  { %v284_v28 = vpop.permute.xlu2 %283 }
  0x74   :  { %v82_v55 = vpop.permute.xlu1 %81 }
  0x75   :  { %v92_v54 = vpop.permute.xlu0 %91  ;;  %v279_v30 = vpop.permute.xlu2 %278 }
  0x7c   :  { %v87_v59 = vpop.permute.xlu1 %86 }
  0x7d   :  { %v97_v58 = vpop.permute.xlu0 %96  ;;  %v254_v32 = vpop.permute.xlu2 %253 }
  0x84   :  { %v147_v48 = vpop.f32.mrf.mxu0  ;;  %v67_v9 = vpop.permute.xlu1 %66 }
  0x85   :  { %v62_v10 = vpop.permute.xlu0 %61  ;;  %v249_v34 = vpop.permute.xlu2 %248 }
  0x86   :  { %v148_v14 = vadd.f32 %v147_v48, %v62_v10 }
  0x88   :  { %v167_v18 = vmax.f32 %v148_v14, 0.0 }
  0x8c   :  { %v149_v49 = vpop.f32.mrf.mxu0  ;;  %v274_v29 = vpop.permute.xlu1 %273 }
  0x8d   :  { %v150_v11 = vadd.f32 %v149_v49, %v67_v9  ;;  %v224_v36 = vpop.permute.xlu2 %223 }
  0x8f   :  { %v168_v16 = vmax.f32 %v150_v11, 0.0 }
  0x91   :  { %v175_v19 = vpack.c.bf16 %v168_v16, %v167_v18 }
  0x94   :  { %v152_v50 = vpop.f32.mrf.mxu0  ;;  %v269_v31 = vpop.permute.xlu1 %268 }
  0x95   :  { %v153_v7 = vadd.f32 %v152_v50, %v72_v57  ;;  %v219_v41 = vpop.permute.xlu2 %218 }
  0x97   :  { %v169_v15 = vmax.f32 %v153_v7, 0.0 }
  0x9c   :  { %v154_v51 = vpop.f32.mrf.mxu0  ;;  %v244_v33 = vpop.permute.xlu1 %243 }
  0x9d   :  { %v155_v4 = vadd.f32 %v154_v51, %v77_v3 }
  0x9f   :  { %v170_v12 = vmax.f32 %v155_v4, 0.0 }
  0xa1   :  { %v176_v17 = vpack.c.bf16 %v170_v12, %v169_v15 }
  0xa4   :  { %v157_v52 = vpop.f32.mrf.mxu0  ;;  %v239_v35 = vpop.permute.xlu1 %238 }
  0xa5   :  { %v158_v0 = vadd.f32 %v157_v52, %v82_v55 }
  0xa7   :  { %v171_v8 = vmax.f32 %v158_v0, 0.0 }
  0xac   :  { %v159_v53 = vpop.f32.mrf.mxu0  ;;  %v214_v38 = vpop.permute.xlu1 %213 }
  0xad   :  { %v160_v62 = vadd.f32 %v159_v53, %v87_v59 }
  0xaf   :  { %v172_v5 = vmax.f32 %v160_v62, 0.0 }
  0xb1   :  { %v177_v13 = vpack.c.bf16 %v172_v5, %v171_v8 }
  0xb4   :  { %v162_v56 = vpop.f32.mrf.mxu0 }
  0xb5   :  { %v163_v60 = vadd.f32 %v162_v56, %v92_v54  ;;  %v289_v54 = vpop.permute.xlu0 %288 }
  0xb7   :  { %v173_v1 = vmax.f32 %v163_v60, 0.0 }
  0xbc   :  { %v164_v61 = vpop.f32.mrf.mxu0 }
  0xbd   :  { %v165_v63 = vadd.f32 %v164_v61, %v97_v58  ;;  %v264_v0 = vpop.permute.xlu0 %263 }
  0xbf   :  { %v174_v2 = vmax.f32 %v165_v63, 0.0 }
  0xc1   :  { %v178_v6 = vpack.c.bf16 %v174_v2, %v173_v1 }
  0xc3   :  { %360 = vmatpush.bf16.msra.mxu1 %v178_v6  ;;  %776 = vmatpush.bf16.msra.mxu3 %v178_v6 }
  0xc5   :  { %v259_v11 = vpop.permute.xlu0 %258 }
  0xc7   :  { %361 = vmatpush.bf16.msra.mxu1 %v177_v13  ;;  %777 = vmatpush.bf16.msra.mxu3 %v177_v13 }
  0xcb   :  { %362 = vmatpush.bf16.msra.mxu1 %v176_v17  ;;  %778 = vmatpush.bf16.msra.mxu3 %v176_v17 }
  0xcd   :  { %v234_v13 = vpop.permute.xlu0 %233 }
  0xcf   :  { %363 = vmatpush.bf16.msra.mxu1 %v175_v19  ;;  %779 = vmatpush.bf16.msra.mxu3 %v175_v19 }
  0xd2   :  { %723 = vmatmul.msk.bf16.vlgmr.msra.gmra.mxu1 %vm331_vm1, %v762_v20  ;;  %728 = vmatmul.msk.bf16.vlgmr.msra.gmra.mxu3 %vm331_vm1, %v767_v21 }
  0xe2   :  { %724 = vmatmul.msk.bf16.gmra.mxu1 %vm331_vm1, %v763_v22  ;;  %729 = vmatmul.msk.bf16.gmra.mxu3 %vm331_vm1, %v768_v23 }
  0xf2   :  { %725 = vmatmul.msk.bf16.gmra.mxu1 %vm331_vm1, %v764_v24  ;;  %730 = vmatmul.msk.bf16.gmra.mxu3 %vm331_vm1, %v769_v25 }
 0x102   :  { %726 = vmatmul.msk.bf16.gmra.mxu1 %vm331_vm1, %v765_v26  ;;  %v229_v26 = vpop.permute.xlu0 %228 }
 0x112   :  { %727 = vmatmul.msk.bf16.gmra.mxu1 %vm331_vm1, %v766_v27 }
 0x14f   :  { %v365_v37 = vpop.f32.mrf.mxu1 }
 0x150   :  { %v366_v40 = vadd.f32 %v365_v37, %v214_v38  ;;  %v771_v38 = vld [vmem:[%s1051_s5 + $0x8] sm:$0xff] }
 0x152   :  { %v405_v44 = vmax.f32 %v366_v40, 0.0 }
 0x155   :  { %v390_v39 = vpop.f32.mrf.mxu3 }
 0x156   :  { %v391_v4 = vadd.f32 %v390_v39, %v264_v0  ;;  %v773_v39 = vld [vmem:[%s1051_s5 + $0x18] sm:$0xff] }
 0x157   :  { %v367_v42 = vpop.f32.mrf.mxu1 }
 0x158   :  { %v368_v43 = vadd.f32 %v367_v42, %v219_v41  ;;  %v415_v9 = vmax.f32 %v391_v4, 0.0 }
 0x15a   :  { %v406_v45 = vmax.f32 %v368_v43, 0.0 }
 0x15c   :  { %v421_v46 = vpack.c.bf16 %v406_v45, %v405_v44 }
 0x15d   :  { %v392_v47 = vpop.f32.mrf.mxu3 }
 0x15e   :  { %v393_v1 = vadd.f32 %v392_v47, %v269_v31  ;;  %v478_v47 = vpop.permute.xlu0 %477 }
 0x15f   :  { %v370_v48 = vpop.f32.mrf.mxu1 }
 0x160   :  { %v416_v6 = vmax.f32 %v393_v1, 0.0 }
 0x162   :  { %v426_v10 = vpack.c.bf16 %v416_v6, %v415_v9 }
 0x165   :  { %v395_v49 = vpop.f32.mrf.mxu3 }
 0x166   :  { %v396_v61 = vadd.f32 %v395_v49, %v274_v29  ;;  %v468_v49 = vpop.permute.xlu2 %467 }
 0x167   :  { %v372_v50 = vpop.f32.mrf.mxu1 }
 0x168   :  { %v417_v5 = vmax.f32 %v396_v61, 0.0  ;;  %v373_v27 = vadd.f32 %v372_v50, %v229_v26 }
 0x16d   :  { %v397_v51 = vpop.f32.mrf.mxu3 }
 0x16e   :  { %v398_v58 = vadd.f32 %v397_v51, %v279_v30  ;;  %v371_v30 = vadd.f32 %v370_v48, %v224_v36  ;;  %v772_v36 = vld [vmem:[%s1051_s5 + $0x10] sm:$0xff] }
 0x16f   :  { %v375_v52 = vpop.f32.mrf.mxu1 }
 0x170   :  { %v418_v2 = vmax.f32 %v398_v58, 0.0  ;;  %v376_v24 = vadd.f32 %v375_v52, %v234_v13  ;;  %v473_v52 = vpop.permute.xlu0 %472  ;;  %v775_v13 = vld [vmem:[%s1052_s7 + $0x8] sm:$0xff] }
 0x172   :  { %v427_v7 = vpack.c.bf16 %v418_v2, %v417_v5  ;;  %v409_v31 = vmax.f32 %v376_v24, 0.0 }
 0x175   :  { %v400_v53 = vpop.f32.mrf.mxu3 }
 0x176   :  { %v401_v56 = vadd.f32 %v400_v53, %v284_v28 }
 0x177   :  { %v377_v55 = vpop.f32.mrf.mxu1 }
 0x178   :  { %v419_v62 = vmax.f32 %v401_v56, 0.0  ;;  %v378_v21 = vadd.f32 %v377_v55, %v239_v35  ;;  %v770_v35 = vld [vmem:[%s1051_s5] sm:$0xff]  ;;  %v448_v5 = vpop.permute.xlu0 %447 }
 0x17a   :  { %v410_v28 = vmax.f32 %v378_v21, 0.0 }
 0x17c   :  { %v423_v37 = vpack.c.bf16 %v410_v28, %v409_v31 }
 0x17d   :  { %v402_v57 = vpop.f32.mrf.mxu3 }
 0x17e   :  { %v403_v59 = vadd.f32 %v402_v57, %v289_v54 }
 0x17f   :  { %v380_v60 = vpop.f32.mrf.mxu1 }
 0x180   :  { %v420_v63 = vmax.f32 %v403_v59, 0.0  ;;  %v381_v18 = vadd.f32 %v380_v60, %v244_v33  ;;  %v463_v59 = vpop.permute.xlu2 %462 }
 0x182   :  { %v428_v3 = vpack.c.bf16 %v420_v63, %v419_v62  ;;  %v411_v25 = vmax.f32 %v381_v18, 0.0 }
 0x184   :  { %509 = vmatpush.bf16.msra.mxu2 %v428_v3 }
 0x187   :  { %v382_v8 = vpop.f32.mrf.mxu1 }
 0x188   :  { %510 = vmatpush.bf16.msra.mxu2 %v427_v7  ;;  %v383_v16 = vadd.f32 %v382_v8, %v249_v34  ;;  %v407_v34 = vmax.f32 %v371_v30, 0.0 }
 0x18a   :  { %v412_v22 = vmax.f32 %v383_v16, 0.0  ;;  %v566_v16 = vpop.permute.xlu0 %565 }
 0x18c   :  { %511 = vmatpush.bf16.msra.mxu2 %v426_v10  ;;  %v424_v29 = vpack.c.bf16 %v412_v22, %v411_v25 }
 0x18f   :  { %v385_v12 = vpop.f32.mrf.mxu1 }
 0x190   :  { %v386_v14 = vadd.f32 %v385_v12, %v254_v32  ;;  %v408_v32 = vmax.f32 %v373_v27, 0.0  ;;  %v774_v12 = vld [vmem:[%s1052_s7] sm:$0xff] }
 0x192   :  { %v413_v19 = vmax.f32 %v386_v14, 0.0  ;;  %v422_v33 = vpack.c.bf16 %v408_v32, %v407_v34  ;;  %v624_v24 = vpop.permute.xlu0 %623 }
 0x197   :  { %v387_v15 = vpop.f32.mrf.mxu1 }
 0x198   :  { %v388_v17 = vadd.f32 %v387_v15, %v259_v11  ;;  %v561_v15 = vpop.permute.xlu2 %560 }
 0x19a   :  { %v414_v20 = vmax.f32 %v388_v17, 0.0 }
 0x19c   :  { %v425_v23 = vpack.c.bf16 %v414_v20, %v413_v19 }
 0x19e   :  { %512 = vmatpush.bf16.msra.mxu2 %v425_v23 }
 0x1a0   :  { %v576_v19 = vpop.permute.xlu2 %575 }
 0x1a2   :  { %513 = vmatpush.bf16.msra.mxu2 %v424_v29 }
 0x1a6   :  { %514 = vmatpush.bf16.msra.mxu2 %v423_v37 }
 0x1a8   :  { %v634_v30 = vpop.permute.xlu2 %633 }
 0x1aa   :  { %515 = vmatpush.bf16.msra.mxu2 %v422_v33 }
 0x1ae   :  { %516 = vmatpush.bf16.msra.mxu2 %v421_v46  ;;  %v483_v46 = vpop.permute.xlu1 %482 }
 0x1b1   :  { %517 = vmatmul.bf16.vlgmr.msra.gmra.mxu2 %v770_v35 }
 0x1b6   :  { %v458_v50 = vpop.permute.xlu1 %457 }
 0x1be   :  { %v453_v1 = vpop.permute.xlu1 %452 }
 0x1c1   :  { %522 = vmatmul.bf16.gmra.mxu2 %v771_v38  ;;  %v639_v38 = vpop.permute.xlu0 %638 }
 0x1c6   :  { %v571_v18 = vpop.permute.xlu1 %570 }
 0x1ce   :  { %v629_v28 = vpop.permute.xlu1 %628 }
 0x1d1   :  { %527 = vmatmul.bf16.gmra.mxu2 %v772_v36 }
 0x1e1   :  { %532 = vmatmul.bf16.gmra.mxu2 %v773_v39 }
 0x234   :  { %v518_v40 = vpop.f32.mrf.mxu2 }
 0x235   :  { %v519_v6 = vadd.f32 %v518_v40, %v448_v5 }
 0x237   :  { %v538_v10 = vmax.f32 %v519_v6, 0.0 }
 0x23c   :  { %v520_v41 = vpop.f32.mrf.mxu2 }
 0x23d   :  { %v521_v2 = vadd.f32 %v520_v41, %v453_v1 }
 0x23f   :  { %v539_v8 = vmax.f32 %v521_v2, 0.0 }
 0x241   :  { %v546_v11 = vpack.c.bf16 %v539_v8, %v538_v10 }
 0x244   :  { %v523_v42 = vpop.f32.mrf.mxu2 }
 0x245   :  { %v524_v63 = vadd.f32 %v523_v42, %v458_v50 }
 0x247   :  { %v540_v7 = vmax.f32 %v524_v63, 0.0 }
 0x24c   :  { %v525_v43 = vpop.f32.mrf.mxu2 }
 0x24d   :  { %v526_v60 = vadd.f32 %v525_v43, %v463_v59 }
 0x24f   :  { %v541_v3 = vmax.f32 %v526_v60, 0.0 }
 0x251   :  { %v547_v9 = vpack.c.bf16 %v541_v3, %v540_v7 }
 0x254   :  { %v528_v44 = vpop.f32.mrf.mxu2 }
 0x255   :  { %v529_v56 = vadd.f32 %v528_v44, %v468_v49 }
 0x257   :  { %v542_v0 = vmax.f32 %v529_v56, 0.0 }
 0x25c   :  { %v530_v45 = vpop.f32.mrf.mxu2 }
 0x25d   :  { %v531_v54 = vadd.f32 %v530_v45, %v473_v52  ;;  %v658_v45 = vpop.permute.xlu1 %657 }
 0x25f   :  { %v543_v61 = vmax.f32 %v531_v54, 0.0 }
 0x261   :  { %v548_v4 = vpack.c.bf16 %v543_v61, %v542_v0 }
 0x264   :  { %v533_v48 = vpop.f32.mrf.mxu2 }
 0x265   :  { %v534_v51 = vadd.f32 %v533_v48, %v478_v47  ;;  %v660_v47 = vperm.slane %v658_v45, 0 }
 0x267   :  { %v544_v57 = vmax.f32 %v534_v51, 0.0 }
 0x26c   :  { %v535_v53 = vpop.f32.mrf.mxu2 }
 0x26d   :  { %v536_v55 = vadd.f32 %v535_v53, %v483_v46 }
 0x26f   :  { %v545_v58 = vmax.f32 %v536_v55, 0.0 }
 0x271   :  { %v549_v62 = vpack.c.bf16 %v545_v58, %v544_v57 }
 0x273   :  { %598 = vmatpush.bf16.msrb.mxu3 %v549_v62 }
 0x277   :  { %599 = vmatpush.bf16.msrb.mxu3 %v548_v4 }
 0x27b   :  { %600 = vmatpush.bf16.msrb.mxu3 %v547_v9 }
 0x27f   :  { %601 = vmatpush.bf16.msrb.mxu3 %v546_v11 }
 0x282   :  { %755 = vmatmul.msk.bf16.vlgmr.msrb.gmra.mxu3 %vm331_vm1, %v774_v12 }
 0x292   :  { %756 = vmatmul.msk.bf16.gmra.mxu3 %vm331_vm1, %v775_v13 }
 0x305   :  { %v603_v14 = vpop.f32.mrf.mxu3 }
 0x306   :  { %v604_v22 = vadd.f32 %v603_v14, %v561_v15 }
 0x308   :  { %v613_v26 = vmax.f32 %v604_v22, 0.0 }
 0x30a   :  { %v641_v32 = vmul.f32 %v624_v24, %v613_v26 }
 0x30d   :  { %v605_v17 = vpop.f32.mrf.mxu3 }
 0x30e   :  { %v606_v20 = vadd.f32 %v605_v17, %v566_v16 }
 0x310   :  { %v614_v25 = vmax.f32 %v606_v20, 0.0 }
 0x312   :  { %v642_v29 = vmul.f32 %v629_v28, %v614_v25 }
 0x314   :  { %v645_v33 = vadd.f32 %v642_v29, %v641_v32 }
 0x315   :  { %v608_v21 = vpop.f32.mrf.mxu3 }
 0x316   :  { %v609_v23 = vadd.f32 %v608_v21, %v571_v18 }
 0x318   :  { %v615_v27 = vmax.f32 %v609_v23, 0.0 }
 0x31a   :  { %v643_v37 = vmul.f32 %v634_v30, %v615_v27 }
 0x31c   :  { %v646_v36 = vadd.f32 %v645_v33, %v643_v37 }
 0x31d   :  { %v610_v31 = vpop.f32.mrf.mxu3 }
 0x31e   :  { %v611_v34 = vadd.f32 %v610_v31, %v576_v19 }
 0x320   :  { %v616_v35 = vmax.f32 %v611_v34, 0.0 }
 0x322   :  { %v644_v39 = vmul.f32 %v639_v38, %v616_v35 }
 0x324   :  { %v647_v40 = vadd.f32 %v646_v36, %v644_v39 }
 0x326   :  { %v648_v41 = vrot.slane %v647_v40, 4 }
 0x328   :  { %v649_v42 = vadd.f32 %v648_v41, %v647_v40 }
 0x32a   :  { %v650_v43 = vrot.slane %v649_v42, 2 }
 0x32c   :  { %v651_v44 = vadd.f32 %v650_v43, %v649_v42 }
 0x32e   :  { %v652_v46 = vrot.slane %v651_v44, 1 }
 0x330   :  { %v653_v48 = vadd.f32 %v652_v46, %v651_v44 }
 0x332   :  { %v661_v49 = vadd.f32 %v660_v47, %v653_v48 }
 0x334   :  { %662 = vst [vmem:[%s1053_s11] sm:$0x1] %v661_v49 }

</bundles_post_ra>
